<compile_context>
chip_gen: v7x
topology: tpu7x:2x2x1
jax: 0.10.0
libtpu: 0.0.40
codegen_flags: <defaults>
</compile_context>

<pallas_src>
import jax
import jax.numpy as jnp
import numpy as np
from jax.experimental import pallas as pl
from jax.experimental.pallas import tpu as pltpu


def _soft_demod_loss_kernel(sig_ref, w_ref, loss_ref):
    # sig_ref: (2B, 2N) f32; rows [0, B) = prediction, rows [B, 2B) = target.
    #          each row is [real_0..N-1 | imag_0..N-1] (contiguous reshape of (2, N)).
    # w_ref:   (2N, 2N) bf16 fused complex demod matrix [[wr, wi], [-wi, wr]].
    # loss_ref: (1, 1) f32 in SMEM.
    sig = sig_ref[...]
    w = w_ref[...]

    two_b, two_n = sig.shape
    b = two_b // 2
    n = two_n // 2

    # ---- fused synthetic soft demodulator: one bf16 MXU matmul + one tanh ----
    # columns [0, N) = real soft bits, columns [N, 2N) = imag soft bits.
    soft = jnp.tanh(
        jnp.dot(sig.astype(jnp.bfloat16), w, preferred_element_type=jnp.float32)
    )

    soft_diff = soft[:b, :] - soft[b:, :]   # (B, 2N): [real diff | imag diff]
    raw_diff = sig[:b, :] - sig[b:, :]      # (B, 2N): raw signal diff

    inv_n_soft = jnp.float32(1.0 / (b * n))      # per-plane MSE divisor (B*N)
    inv_n_sig = jnp.float32(1.0 / (b * two_n))   # full (B, 2, N) MSE divisor

    # soft_loss = MSE(real) + MSE(imag); both planes share the B*N divisor, so
    # it is exactly the sum over the whole (B, 2N) squared diff * 1/(B*N).
    soft_loss = jnp.sum(soft_diff * soft_diff) * inv_n_soft
    mse_loss = jnp.sum(raw_diff * raw_diff) * inv_n_sig

    loss_ref[0, 0] = soft_loss + mse_loss


def make_demod_weights(n: int):
    """Deterministic DFT-like demodulation matrix.

    Returns:
      w_fused: (2n, 2n) bf16 block matrix [[wr, wi], [-wi, wr]] for the kernel.
      wr, wi:  (n, n) f32 real/imag parts (for the pure-JAX reference).
    """
    k = np.arange(n)[:, None]
    m = np.arange(n)[None, :]
    ang = 2.0 * np.pi * k * m / n
    wr = (np.cos(ang) / np.sqrt(n)).astype(np.float32)
    wi = (-np.sin(ang) / np.sqrt(n)).astype(np.float32)
    w_fused = np.block([[wr, wi], [-wi, wr]]).astype(np.float32)
    return (jnp.asarray(w_fused, dtype=jnp.bfloat16),
            jnp.asarray(wr), jnp.asarray(wi))


@jax.jit
def soft_demod_loss(sig_pred, sig_target, w_fused):
    """sig_pred / sig_target: (B, 2, N) float32, channel 0 = real, 1 = imag."""
    B, C, N = sig_pred.shape
    two_n = C * N

    # Contiguous reshape (no strided slices): row = [real_0..N-1 | imag_0..N-1].
    lhs = jnp.concatenate(
        [sig_pred.reshape(B, two_n), sig_target.reshape(B, two_n)], axis=0
    )  # (2B, 2N) f32

    cost = pl.CostEstimate(
        flops=2 * (2 * B) * two_n * two_n,
        transcendentals=(2 * B) * two_n,
        bytes_accessed=lhs.size * 4 + w_fused.size * 2 + 4,
    )

    loss = pl.pallas_call(
        _soft_demod_loss_kernel,
        out_shape=jax.ShapeDtypeStruct((1, 1), jnp.float32),
        in_specs=[
            pl.BlockSpec(memory_space=pltpu.MemorySpace.VMEM),
            pl.BlockSpec(memory_space=pltpu.MemorySpace.VMEM),
        ],
        out_specs=pl.BlockSpec(memory_space=pltpu.MemorySpace.SMEM),
        compiler_params=pltpu.CompilerParams(vmem_limit_bytes=32 << 20),
        cost_estimate=cost,
    )(lhs, w_fused)
    return loss[0, 0]


def soft_demod_loss_ref(sig_pred, sig_target, wr, wi):
    """Pure-JAX f32 reference matching the unfused PyTorch formulation."""
    pr, pi = sig_pred[:, 0, :], sig_pred[:, 1, :]
    tr, ti = sig_target[:, 0, :], sig_target[:, 1, :]
    sp_r = jnp.tanh(pr @ wr - pi @ wi)
    sp_i = jnp.tanh(pr @ wi + pi @ wr)
    st_r = jnp.tanh(tr @ wr - ti @ wi)
    st_i = jnp.tanh(tr @ wi + ti @ wr)
    soft_loss = jnp.mean((st_r - sp_r) ** 2) + jnp.mean((st_i - sp_i) ** 2)
    mse_loss = jnp.mean((sig_pred - sig_target) ** 2)
    return soft_loss + mse_loss


if __name__ == "__main__":
    B, N = 2, 128  # batch of 2 frames, 128 complex samples -> sig (2, 2, 128)
    key = jax.random.PRNGKey(0)
    k1, k2 = jax.random.split(key)
    sig_pred = jax.random.normal(k1, (B, 2, N), dtype=jnp.float32)
    sig_target = sig_pred + 0.1 * jax.random.normal(k2, (B, 2, N), dtype=jnp.float32)

    w_fused, wr, wi = make_demod_weights(N)

    # TODO(synk): the original module's host-side numpy round-trip
    # (.detach().cpu(), np.real/np.imag) and loss.requires_grad_(True) have no
    # on-device meaning; the synthetic linear+tanh demodulator stands in for
    # the external demodulator module.
    loss = soft_demod_loss(sig_pred, sig_target, w_fused)
    jax.block_until_ready(loss)

    # Validate against the f32 reference (relaxed tolerance: bf16 MXU operands).
    ref = soft_demod_loss_ref(sig_pred, sig_target, wr, wi)
    rel_err = abs(float(loss) - float(ref)) / max(abs(float(ref)), 1e-6)
    assert rel_err < 0.1, f"mismatch: kernel={float(loss)} ref={float(ref)}"

    print("KERNEL_OK")
</pallas_src>

<mosaic_0001>
module attributes {stable_mosaic.version = 11 : i64} {
  func.func @_soft_demod_loss_kernel(%arg0: memref<4x256xf32, #tpu.memory_space<vmem>>, %arg1: memref<256x256xbf16, #tpu.memory_space<vmem>>, %arg2: memref<1x1xf32, #tpu.memory_space<smem>>) attributes {dimension_semantics = [], scalar_prefetch = 0 : i64, scratch_operands = 0 : i64, tpu.core_type = #tpu.core_type<tc>} {
    %c0 = arith.constant 0 : index
    %c0_0 = arith.constant 0 : index
    %0 = vector.load %arg0[%c0, %c0_0] : memref<4x256xf32, #tpu.memory_space<vmem>>, vector<4x256xf32>
    %c0_1 = arith.constant 0 : index
    %c0_2 = arith.constant 0 : index
    %1 = vector.load %arg1[%c0_1, %c0_2] : memref<256x256xbf16, #tpu.memory_space<vmem>>, vector<256x256xbf16>
    %2 = arith.truncf %0 : vector<4x256xf32> to vector<4x256xbf16>
    %cst = arith.constant dense<0.000000e+00> : vector<4x256xf32>
    %3 = tpu.matmul %2, %1, %cst {dimension_numbers = #tpu.dot_dimension_numbers<[1], [0], [0], [1], [0, 0, 1, 1], [], []>} : vector<4x256xbf16>, vector<256x256xbf16>, vector<4x256xf32> -> vector<4x256xf32>
    %4 = math.tanh %3 : vector<4x256xf32>
    %5 = vector.extract_strided_slice %4 {offsets = [0, 0], sizes = [2, 256], strides = [1, 1]} : vector<4x256xf32> to vector<2x256xf32>
    %6 = vector.extract_strided_slice %4 {offsets = [2, 0], sizes = [2, 256], strides = [1, 1]} : vector<4x256xf32> to vector<2x256xf32>
    %7 = arith.subf %5, %6 : vector<2x256xf32>
    %8 = vector.extract_strided_slice %0 {offsets = [0, 0], sizes = [2, 256], strides = [1, 1]} : vector<4x256xf32> to vector<2x256xf32>
    %9 = vector.extract_strided_slice %0 {offsets = [2, 0], sizes = [2, 256], strides = [1, 1]} : vector<4x256xf32> to vector<2x256xf32>
    %10 = arith.subf %8, %9 : vector<2x256xf32>
    %11 = arith.mulf %7, %7 : vector<2x256xf32>
    %12 = vector.shape_cast %11 : vector<2x256xf32> to vector<1x2x256xf32>
    %cst_3 = arith.constant dense<0.000000e+00> : vector<1xf32>
    %13 = vector.multi_reduction <add>, %12, %cst_3 [1, 2] : vector<1x2x256xf32> to vector<1xf32>
    %14 = vector.shape_cast %13 : vector<1xf32> to vector<1x1x1xf32>
    %15 = vector.extract %14[0, 0, 0] : f32 from vector<1x1x1xf32>
    %cst_4 = arith.constant 3.906250e-03 : f32
    %16 = arith.mulf %15, %cst_4 : f32
    %17 = arith.mulf %10, %10 : vector<2x256xf32>
    %18 = vector.shape_cast %17 : vector<2x256xf32> to vector<1x2x256xf32>
    %cst_5 = arith.constant dense<0.000000e+00> : vector<1xf32>
    %19 = vector.multi_reduction <add>, %18, %cst_5 [1, 2] : vector<1x2x256xf32> to vector<1xf32>
    %20 = vector.shape_cast %19 : vector<1xf32> to vector<1x1x1xf32>
    %21 = vector.extract %20[0, 0, 0] : f32 from vector<1x1x1xf32>
    %cst_6 = arith.constant 0.001953125 : f32
    %22 = arith.mulf %21, %cst_6 : f32
    %23 = arith.addf %16, %22 : f32
    %c0_7 = arith.constant 0 : index
    %c0_8 = arith.constant 0 : index
    %24 = memref.load %arg2[%c0_7, %c0_8] : memref<1x1xf32, #tpu.memory_space<smem>>
    memref.store %23, %arg2[%c0_7, %c0_8] : memref<1x1xf32, #tpu.memory_space<smem>>
    return
  }
}

</mosaic_0001>

<bundles_post_ra>
// kernel: soft_demod_loss.1
= control target key start
LH: loop header
LB: loop body
LE: loop exit
PB: predicated region body
PF: predicated region fallthrough
CT: control target
= control target key end

     0   :  { %7 = vsyncpa [#allocation3], 0  ;;  %s505_s0 = inlined_call_operand.vmem [shape: f32[4,256], index: 0, kind: input, shape index: {}]   ;;  %s506_s1 = inlined_call_operand.hbm [shape: bf16[256,256], index: 1, kind: input, shape index: {}]   ;;  %s507_s2 = inlined_call_operand.hbm [shape: f32[1,1], index: 2, kind: output, shape index: {}]  }
   0x1   :  { %8 = vsyncpa [#allocation4], 0  ;;  %s459_s9 = smov [#allocation2]   ;;  %s423_s13 = scalar_lea.hbm %s506_s1, 4096 }
   0x2   :  { %s16_s10 = sshll.u32 %s459_s9, 4  ;;  %p424_p0 = scmp.ne.s32.totalorder %s506_s1, %s423_s13  ;;  %s17_s10 = int_to_ptr.vmem [resolvable:$true] %s16_s10 }
   0x3   :  { %p427_p1 = scmp.lt.u32.totalorder %s423_s13, %s506_s1 }
   0x5   :  { %p429_p2 = pnand %p427_p1, %p424_p0 }
   0x7   :  { %432 = shalt.err (!%p429_p2)
}
   0x8   :  { %s433_s18 = scalar_lea.vmem %s17_s10, 4096  ;;  %p438_p4 = scmp.lt.s32.totalorder %s17_s10, %s17_s10 }
   0x9   :  { %p434_p3 = scmp.ne.s32.totalorder %s17_s10, %s433_s18  ;;  %p439_p5 = scmp.lt.s32.totalorder %s433_s18, %s433_s18 }
   0xb   :  { %p440_p6 = por %p439_p5, %p438_p4 }
   0xd   :  { %p441_p7 = pnand %p440_p6, %p434_p3 }
   0xf   :  { %444 = shalt.err (!%p441_p7)
}
  0x10   :  { %s460_s19 = smov 128   ;;  %s461_s20 = smov 8  }
  0x11   :  { %22 = dma.hbm_to_vmem [thread:$0]  %s506_s1, 4096, %s17_s10, [#allocation3], %s460_s19, %s460_s19, %s461_s20  }
  0x12   :  { %455 = dma.done.wait [#allocation3], 4096  }
  0x13   :  { %456 = vsyncadd [#allocation3], 4294963200  ;;  %v370_v0 = vld [vmem:[#allocation2 + $0x4] ss:$8 sps:$4 sm:$0xff]   ;;  %v372_v1 = vld [vmem:[#allocation2] ss:$8 sps:$4 sm:$0xff]  }
  0x14   :  { %224 = vmatprep.subr.bf16.mxu0 %v370_v0  ;;  %v373_v2 = vld [vmem:[#allocation2 + $0x14] ss:$8 sps:$4 sm:$0xff]   ;;  %v375_v3 = vld [vmem:[#allocation2 + $0x10] ss:$8 sps:$4 sm:$0xff]   ;;  %v376_v4 = vld [vmem:[#allocation2 + $0x24] ss:$8 sps:$4 sm:$0xff]  }
  0x15   :  { %225 = vmatpush1.bf16.msra.mxu0 %v372_v1  ;;  %v378_v5 = vld [vmem:[#allocation2 + $0x20] ss:$8 sps:$4 sm:$0xff]   ;;  %v379_v6 = vld [vmem:[#allocation2 + $0x34] ss:$8 sps:$4 sm:$0xff]   ;;  %v381_v7 = vld [vmem:[#allocation2 + $0x30] ss:$8 sps:$4 sm:$0xff]  }
  0x16   :  { %226 = vmatprep.subr.bf16.mxu0 %v373_v2  ;;  %v382_v8 = vld [vmem:[#allocation2 + $0x44] ss:$8 sps:$4 sm:$0xff]   ;;  %v384_v9 = vld [vmem:[#allocation2 + $0x40] ss:$8 sps:$4 sm:$0xff]   ;;  %v385_v10 = vld [vmem:[#allocation2 + $0x54] ss:$8 sps:$4 sm:$0xff]  }
  0x17   :  { %v387_v11 = vld [vmem:[#allocation2 + $0x50] ss:$8 sps:$4 sm:$0xff]   ;;  %v388_v12 = vld [vmem:[#allocation2 + $0x64] ss:$8 sps:$4 sm:$0xff]   ;;  %v390_v15 = vld [vmem:[#allocation2 + $0x60] ss:$8 sps:$4 sm:$0xff]  }
  0x18   :  { %v26_v13 = vld [vmem:[%s505_s0] sm:$0xff]  ;;  %v391_v16 = vld [vmem:[#allocation2 + $0x74] ss:$8 sps:$4 sm:$0xff]   ;;  %v393_v18 = vld [vmem:[#allocation2 + $0x70] ss:$8 sps:$4 sm:$0xff]   ;;  %vm281_vm0 = vcmask 1041408  }
  0x19   :  { %227 = vmatpush1.bf16.msra.mxu0 %v375_v3  ;;  %v60_v14 = vcombine.high %v26_v13, %v26_v13  ;;  %v394_v19 = vld [vmem:[#allocation2 + $0x84] ss:$8 sps:$4 sm:$0xff]   ;;  %v396_v20 = vld [vmem:[#allocation2 + $0x80] ss:$8 sps:$4 sm:$0xff]   ;;  %v397_v21 = vld [vmem:[#allocation2 + $0x94] ss:$8 sps:$4 sm:$0xff]   ;;  %v62_v35 = vpack.c.bf16 %v26_v13, %v26_v13 }
  0x1a   :  { %228 = vmatprep.subr.bf16.mxu0 %v376_v4  ;;  %v399_v22 = vld [vmem:[#allocation2 + $0x90] ss:$8 sps:$4 sm:$0xff]   ;;  %v400_v23 = vld [vmem:[#allocation2 + $0xa4] ss:$8 sps:$4 sm:$0xff]   ;;  %v402_v24 = vld [vmem:[#allocation2 + $0xa0] ss:$8 sps:$4 sm:$0xff]  }
  0x1b   :  { %v63_v17 = vpack.c.bf16 %v60_v14, %v60_v14  ;;  %v403_v25 = vld [vmem:[#allocation2 + $0xb4] ss:$8 sps:$4 sm:$0xff]   ;;  %v405_v26 = vld [vmem:[#allocation2 + $0xb0] ss:$8 sps:$4 sm:$0xff]   ;;  %v406_v27 = vld [vmem:[#allocation2 + $0xc4] ss:$8 sps:$4 sm:$0xff]  }
  0x1c   :  { %v408_v28 = vld [vmem:[#allocation2 + $0xc0] ss:$8 sps:$4 sm:$0xff]   ;;  %v409_v29 = vld [vmem:[#allocation2 + $0xd4] ss:$8 sps:$4 sm:$0xff]   ;;  %v411_v30 = vld [vmem:[#allocation2 + $0xd0] ss:$8 sps:$4 sm:$0xff]  }
  0x1d   :  { %229 = vmatpush1.bf16.msra.mxu0 %v378_v5  ;;  %256 = vmatprep.mubr.bf16.mxu0 %v63_v17  ;;  %v412_v31 = vld [vmem:[#allocation2 + $0xe4] ss:$8 sps:$4 sm:$0xff]   ;;  %v414_v32 = vld [vmem:[#allocation2 + $0xe0] ss:$8 sps:$4 sm:$0xff]   ;;  %v415_v33 = vld [vmem:[#allocation2 + $0xf4] ss:$8 sps:$4 sm:$0xff]  }
  0x1e   :  { %230 = vmatprep.subr.bf16.mxu0 %v379_v6  ;;  %v417_v34 = vld [vmem:[#allocation2 + $0xf0] ss:$8 sps:$4 sm:$0xff]   ;;  %v361_v40 = vrot.slane %v26_v13, 10  ;;  %s445_s30 = scalar_lea.hbm %s507_s2, 16 }
  0x1f   :  { %p446_p8 = scmp.ne.s32.totalorder %s507_s2, %s445_s30  ;;  %p449_p9 = scmp.lt.u32.totalorder %s445_s30, %s507_s2 }
  0x20   :  { %v278_v41 = vsub.f32 %v26_v13, %v361_v40 }
  0x21   :  { %231 = vmatpush1.bf16.msra.mxu0 %v381_v7  ;;  %p451_p10 = pnand %p449_p9, %p446_p8 }
  0x22   :  { %232 = vmatprep.subr.bf16.mxu0 %v382_v8  ;;  %v295_v43 = vmul.f32 %v278_v41, %v278_v41 }
  0x24   :  { %v297_v49 = vcombine.high %v295_v43, %v295_v43  ;;  %v299_v54 = vsel %vm281_vm0, %v295_v43, 0.0 }
  0x25   :  { %233 = vmatpush1.bf16.msra.mxu0 %v384_v9 }
  0x26   :  { %234 = vmatprep.subr.bf16.mxu0 %v385_v10  ;;  %v300_v55 = vsel %vm281_vm0, %v297_v49, 0.0 }
  0x27   :  { %v301_v57 = vadd.f32 %v300_v55, %v299_v54 }
  0x29   :  { %235 = vmatpush1.bf16.msra.mxu0 %v387_v11 }
  0x2a   :  { %236 = vmatprep.subr.bf16.mxu0 %v388_v12 }
  0x2d   :  { %237 = vmatpush1.bf16.msra.mxu0 %v390_v15 }
  0x2e   :  { %238 = vmatprep.subr.bf16.mxu0 %v391_v16 }
  0x31   :  { %239 = vmatpush1.bf16.msra.mxu0 %v393_v18 }
  0x32   :  { %240 = vmatprep.subr.bf16.mxu0 %v394_v19 }
  0x35   :  { %241 = vmatpush1.bf16.msra.mxu0 %v396_v20 }
  0x36   :  { %242 = vmatprep.subr.bf16.mxu0 %v397_v21 }
  0x39   :  { %243 = vmatpush1.bf16.msra.mxu0 %v399_v22 }
  0x3a   :  { %244 = vmatprep.subr.bf16.mxu0 %v400_v23 }
  0x3d   :  { %245 = vmatpush1.bf16.msra.mxu0 %v402_v24 }
  0x3e   :  { %246 = vmatprep.subr.bf16.mxu0 %v403_v25 }
  0x41   :  { %247 = vmatpush1.bf16.msra.mxu0 %v405_v26 }
  0x42   :  { %248 = vmatprep.subr.bf16.mxu0 %v406_v27 }
  0x45   :  { %249 = vmatpush1.bf16.msra.mxu0 %v408_v28 }
  0x46   :  { %250 = vmatprep.subr.bf16.mxu0 %v409_v29 }
  0x49   :  { %251 = vmatpush1.bf16.msra.mxu0 %v411_v30 }
  0x4a   :  { %252 = vmatprep.subr.bf16.mxu0 %v412_v31 }
  0x4d   :  { %253 = vmatpush1.bf16.msra.mxu0 %v414_v32 }
  0x4e   :  { %254 = vmatprep.subr.bf16.mxu0 %v415_v33 }
  0x51   :  { %255 = vmatpush1.bf16.msra.mxu0 %v417_v34 }
  0x54   :  { %257 = vmatmul.mubr.bf16.vlgmr.msra.gmra.mrb[0].mxu0 %v62_v35 }
 0x127   :  { %v258_v36 = vpop.f32.mrb[0].mxu0 }
 0x128   :  { %419 = vtanh.f32 %v258_v36  ;;  %v260_v37 = vpop.f32.mrb[1].mxu0 }
 0x129   :  { %421 = vtanh.f32 %v260_v37  ;;  %v262_v38 = vpop.f32.mrb[2].mxu0 }
 0x12a   :  { %v263_v39 = vpop.f32.mrb[3].mxu0 }
 0x132   :  { %v420_v42 = vpop.eup %419 }
 0x133   :  { %v422_v44 = vpop.eup %421  ;;  %v269_v45 = vrot.slane %v420_v42, 2 }
 0x134   :  { %v270_v46 = vrot.slane %v422_v44, 2 }
 0x135   :  { %v273_v47 = vsub.f32 %v420_v42, %v269_v45 }
 0x136   :  { %v274_v48 = vsub.f32 %v422_v44, %v270_v46 }
 0x137   :  { %v279_v50 = vmul.f32 %v273_v47, %v273_v47 }
 0x138   :  { %v280_v51 = vmul.f32 %v274_v48, %v274_v48 }
 0x139   :  { %v282_v52 = vsel %vm281_vm0, %v279_v50, 0.0 }
 0x13a   :  { %v283_v53 = vsel %vm281_vm0, %v280_v51, 0.0 }
 0x13b   :  { %v284_v56 = vadd.f32 %v283_v53, %v282_v52 }
 0x13d   :  { %285 = vadd.xlane.f32.xlu0 %v284_v56 }
 0x141   :  { %302 = vadd.xlane.f32.xlu0 %v301_v57 }
 0x1ca   :  { %v286_v58 = vpop.xlane.xlu0 %285 }
 0x1cb   :  { %v287_v59 = vrot.slane %v286_v58, 4 }
 0x1cd   :  { %v288_v60 = vadd.f32 %v287_v59, %v286_v58 }
 0x1ce   :  { %v303_v61 = vpop.xlane.xlu0 %302 }
 0x1cf   :  { %v289_v62 = vrot.slane %v288_v60, 2  ;;  %v304_v63 = vrot.slane %v303_v61, 4 }
 0x1d1   :  { %v305_v0 = vadd.f32 %v304_v63, %v303_v61  ;;  %v290_v1 = vadd.f32 %v289_v62, %v288_v60 }
 0x1d3   :  { %v306_v2 = vrot.slane %v305_v0, 2  ;;  %v291_v3 = vrot.slane %v290_v1, 1 }
 0x1d5   :  { %v307_v4 = vadd.f32 %v306_v2, %v305_v0  ;;  %v292_v5 = vadd.f32 %v291_v3, %v290_v1 }
 0x1d7   :  { %362 = vpush %v292_v5  ;;  %v308_v6 = vrot.slane %v307_v4, 1 }
 0x1d9   :  { %v309_v7 = vadd.f32 %v308_v6, %v307_v4 }
 0x1db   :  { %364 = vpush %v309_v7 }
 0x208   :  { %s363_s0 = spop %362 }
 0x209   :  { %s294_s24 = smul.f32 0.00390625, %s363_s0 }
 0x20c   :  { %s365_s25 = spop %364 }
 0x20d   :  { %s311_s26 = smul.f32 0.001953125, %s365_s25 }
 0x20f   :  { %s312_s27 = sadd.f32 %s311_s26, %s294_s24 }
 0x211   :  { %314 = sst [smem:[#allocation5]] %s312_s27 }
 0x212   :  { %454 = shalt.err (!%p451_p10)
}
 0x213   :  { %s462_s7 = smov [#allocation5]  }
 0x214   :  { %322 = dma.smem_to_hbm %s462_s7, 16, %s507_s2, [#allocation4]  }
 0x215   :  { %457 = dma.done.wait [#allocation4], 16  }
 0x216   :  { %458 = vsyncadd [#allocation4], 4294967280 }
 0x217   :  { %326 = sfence }
 0x218   :  { %327 = vsyncpa [#allocation3], 1 }
 0x219   :  { %328 = vsyncpa [#allocation4], 1 }

</bundles_post_ra>
